<compile_context>
chip_gen: v6e
topology: v6e:2x2x1
jax: 0.10.0
libtpu: 0.0.40
codegen_flags: <defaults>
</compile_context>

<pallas_src>
from functools import partial

import jax
import jax.numpy as jnp
from jax.experimental import pallas as pl
from jax.experimental.pallas import tpu as pltpu


def residual_block_kernel(x_ref,
                          ln1_w_ref, ln1_b_ref,
                          w_qkv_ref, b_qkv_ref,
                          w_out_ref, out_b_ref,
                          ln2_w_ref, ln2_b_ref,
                          fc_w_ref, fc_b_ref,
                          proj_w_ref, proj_b_ref,
                          o_ref,
                          *, n_head: int):
    x = x_ref[0]                                   # (S, D) float32
    S, D = x.shape
    H = n_head
    hd = D // H
    eps = 1e-5

    # Read small params once at kernel top.
    ln1_w = ln1_w_ref[0]
    ln1_b = ln1_b_ref[0]
    ln2_w = ln2_w_ref[0]
    ln2_b = ln2_b_ref[0]
    out_b = out_b_ref[0]
    fc_b = fc_b_ref[0]
    proj_b = proj_b_ref[0]

    def layernorm(v, w, b):
        mu = jnp.mean(v, axis=-1, keepdims=True)
        var = jnp.mean((v - mu) ** 2, axis=-1, keepdims=True)
        return (v - mu) * jax.lax.rsqrt(var + eps) * w + b

    # ---- self-attention branch: x + MHA(ln_1(x)) ----
    x1 = layernorm(x, ln1_w, ln1_b)                                   # (S, D) f32

    # Head-major QKV projection: w_qkv is (H, D, 3*hd) bf16 with the
    # 1/sqrt(hd) query scale already folded into its q columns (and b_qkv's
    # q segment).  Batched matmul with a leading head axis -> (H, S, 3*hd).
    x1h = jnp.broadcast_to(x1.astype(jnp.bfloat16), (H, S, D))
    qkv = jnp.einsum('hsd,hde->hse', x1h, w_qkv_ref[...],
                     preferred_element_type=jnp.float32) + b_qkv_ref[...]

    qh = qkv[..., :hd].astype(jnp.bfloat16)            # (H, S, hd)
    kh = qkv[..., hd:2 * hd].astype(jnp.bfloat16)      # (H, S, hd)
    vh = qkv[..., 2 * hd:].astype(jnp.bfloat16)        # (H, S, hd)

    # Batched attention (no per-head loop, no explicit transposes).
    s = jnp.einsum('hqd,hkd->hqk', qh, kh,
                   preferred_element_type=jnp.float32)                # (H, S, S) f32
    s = s - jnp.max(s, axis=-1, keepdims=True)
    p = jnp.exp(s)
    p = p * pl.reciprocal(jnp.sum(p, axis=-1, keepdims=True), approx=True)

    o = jnp.einsum('hqk,hkd->hqd', p.astype(jnp.bfloat16), vh,
                   preferred_element_type=jnp.float32)                # (H, S, hd) f32

    # Out-projection with head-major weight (H, hd, D); summing over the head
    # axis is equivalent to concat(heads) @ W_out^T and keeps stores lane-dense.
    attn = jnp.sum(
        jnp.einsum('hsd,hde->hse', o.astype(jnp.bfloat16), w_out_ref[...],
                   preferred_element_type=jnp.float32),
        axis=0) + out_b                                               # (S, D) f32
    x = x + attn                                   # residual (drop_path = identity)

    # ---- MLP branch: x + c_proj(QuickGELU(c_fc(ln_2(x)))) ----
    x2 = layernorm(x, ln2_w, ln2_b)
    h1 = jnp.dot(x2.astype(jnp.bfloat16), fc_w_ref[...],              # fc_w: (D, 4D) bf16
                 preferred_element_type=jnp.float32) + fc_b           # (S, 4D) f32
    h1 = h1 * jax.nn.sigmoid(1.702 * h1)           # QuickGELU
    h2 = jnp.dot(h1.astype(jnp.bfloat16), proj_w_ref[...],            # proj_w: (4D, D) bf16
                 preferred_element_type=jnp.float32) + proj_b         # (S, D) f32

    o_ref[0] = x + h2


def _prepare_weights(params, n_head):
    """Host-side, one-time weight prep: head-major layouts, folded q scale, bf16."""
    D = params["out_w"].shape[0]
    H = n_head
    hd = D // H
    scale = 1.0 / (hd ** 0.5)

    w_in_t = params["in_w"].T                    # (D, 3D), columns = [q | k | v]
    b_in = params["in_b"][0]                     # (3D,)

    def w_heads(w):                              # (D, D) -> (H, D, hd)
        return jnp.transpose(w.reshape(D, H, hd), (1, 0, 2))

    def b_heads(b):                              # (D,) -> (H, 1, hd)
        return b.reshape(H, hd)[:, None, :]

    w_qkv = jnp.concatenate(
        [w_heads(w_in_t[:, :D] * scale),         # fold 1/sqrt(hd) into q
         w_heads(w_in_t[:, D:2 * D]),
         w_heads(w_in_t[:, 2 * D:])], axis=-1).astype(jnp.bfloat16)   # (H, D, 3hd)
    b_qkv = jnp.concatenate(
        [b_heads(b_in[:D] * scale),
         b_heads(b_in[D:2 * D]),
         b_heads(b_in[2 * D:])], axis=-1).astype(jnp.float32)         # (H, 1, 3hd)

    w_out = params["out_w"].T.reshape(H, hd, D).astype(jnp.bfloat16)  # (H, hd, D)

    return [
        params["ln1_w"], params["ln1_b"],
        w_qkv, b_qkv,
        w_out, params["out_b"],
        params["ln2_w"], params["ln2_b"],
        params["fc_w"].T.astype(jnp.bfloat16),    # (D, 4D)
        params["fc_b"],
        params["proj_w"].T.astype(jnp.bfloat16),  # (4D, D)
        params["proj_b"],
    ]


def _vmem_limit_bytes():
    """Per-generation scoped-VMEM budget (never >= physical VMEM)."""
    kind = jax.devices()[0].device_kind.lower()
    if "v7" in kind:
        return 56 * 1024 * 1024                  # v7x: 64 MiB physical per TC
    if "v6" in kind or "v5e" in kind or "v5 lite" in kind or "v5litepod" in kind:
        return 100 * 1024 * 1024                 # v5e/v6e: 128 MiB physical
    return None                                  # unknown chip: compiler default


def residual_attention_block(x_sbd, params, n_head):
    """x_sbd: (S, B, D) float32 -> (S, B, D) float32."""
    S, B, D = x_sbd.shape
    assert D % n_head == 0
    x = jnp.transpose(x_sbd, (1, 0, 2)).astype(jnp.float32)          # (B, S, D)

    prepared = _prepare_weights(params, n_head)

    cp_kwargs = dict(dimension_semantics=("parallel",))  # batch elems independent;
    # on v7x keep B >= 2 so both TensorCores get work.
    vmem_limit = _vmem_limit_bytes()
    if vmem_limit is not None:
        cp_kwargs["vmem_limit_bytes"] = vmem_limit

    out = pl.pallas_call(
        partial(residual_block_kernel, n_head=n_head),
        out_shape=jax.ShapeDtypeStruct((B, S, D), jnp.float32),
        grid=(B,),
        in_specs=[pl.BlockSpec((1, S, D), lambda b: (b, 0, 0))]
                 + [pl.BlockSpec(p.shape, lambda b, _nd=p.ndim: (0,) * _nd)
                    for p in prepared],
        out_specs=pl.BlockSpec((1, S, D), lambda b: (b, 0, 0)),
        compiler_params=pltpu.CompilerParams(**cp_kwargs),
    )(x, *prepared)

    return jnp.transpose(out, (1, 0, 2))           # back to (S, B, D)


def make_params(key, d_model):
    ks = jax.random.split(key, 6)
    D = d_model
    scale = 0.02
    return {
        "ln1_w": jnp.ones((1, D), jnp.float32),
        "ln1_b": jnp.zeros((1, D), jnp.float32),
        "in_w": scale * jax.random.normal(ks[0], (3 * D, D), jnp.float32),
        "in_b": scale * jax.random.normal(ks[1], (1, 3 * D), jnp.float32),
        "out_w": scale * jax.random.normal(ks[2], (D, D), jnp.float32),
        "out_b": jnp.zeros((1, D), jnp.float32),
        "ln2_w": jnp.ones((1, D), jnp.float32),
        "ln2_b": jnp.zeros((1, D), jnp.float32),
        "fc_w": scale * jax.random.normal(ks[3], (4 * D, D), jnp.float32),
        "fc_b": scale * jax.random.normal(ks[4], (1, 4 * D), jnp.float32),
        "proj_w": scale * jax.random.normal(ks[5], (D, 4 * D), jnp.float32),
        "proj_b": jnp.zeros((1, D), jnp.float32),
    }


def reference_block(x_sbd, params, n_head):
    """Pure-JAX f32 reference mirroring PyTorch semantics (attn_mask=None, drop_path=0)."""
    S, B, D = x_sbd.shape
    hd = D // n_head
    eps = 1e-5

    def ln(v, w, b):
        mu = jnp.mean(v, axis=-1, keepdims=True)
        var = jnp.mean((v - mu) ** 2, axis=-1, keepdims=True)
        return (v - mu) / jnp.sqrt(var + eps) * w[0] + b[0]

    x = jnp.transpose(x_sbd, (1, 0, 2))            # (B, S, D)

    x1 = ln(x, params["ln1_w"], params["ln1_b"])
    qkv = jnp.einsum("bsd,ed->bse", x1, params["in_w"]) + params["in_b"][0]
    q, k, v = jnp.split(qkv, 3, axis=-1)
    q = q.reshape(B, S, n_head, hd).transpose(0, 2, 1, 3) / jnp.sqrt(hd)
    k = k.reshape(B, S, n_head, hd).transpose(0, 2, 1, 3)
    v = v.reshape(B, S, n_head, hd).transpose(0, 2, 1, 3)
    s = jnp.einsum("bhqd,bhkd->bhqk", q, k)
    p = jax.nn.softmax(s, axis=-1)
    a = jnp.einsum("bhqk,bhkd->bhqd", p, v).transpose(0, 2, 1, 3).reshape(B, S, D)
    a = jnp.einsum("bsd,ed->bse", a, params["out_w"]) + params["out_b"][0]
    x = x + a

    x2 = ln(x, params["ln2_w"], params["ln2_b"])
    h = jnp.einsum("bsd,ed->bse", x2, params["fc_w"]) + params["fc_b"][0]
    h = h * jax.nn.sigmoid(1.702 * h)
    h = jnp.einsum("bse,de->bsd", h, params["proj_w"]) + params["proj_b"][0]
    x = x + h
    return jnp.transpose(x, (1, 0, 2))


if __name__ == "__main__":
    S, B, D, H = 8, 2, 32, 4
    key = jax.random.PRNGKey(0)
    kx, kp = jax.random.split(key)
    x = jax.random.normal(kx, (S, B, D), jnp.float32)
    params = make_params(kp, D)

    out = residual_attention_block(x, params, H)
    out = jax.block_until_ready(out)

    ref = reference_block(x, params, H)
    assert out.shape == (S, B, D)
    max_err = jnp.max(jnp.abs(out - ref))
    # bf16 matmul inputs with f32 accumulation -> bf16-appropriate tolerance.
    assert jnp.allclose(out, ref, atol=1e-2, rtol=1e-2), f"max abs err {max_err}"
    print("KERNEL_OK")
</pallas_src>

<mosaic_0001>
module attributes {stable_mosaic.version = 11 : i64} {
  func.func @residual_block_kernel(%arg0: i32, %arg1: memref<1x8x32xf32, #tpu.memory_space<vmem>>, %arg2: memref<1x32xf32, #tpu.memory_space<vmem>>, %arg3: memref<1x32xf32, #tpu.memory_space<vmem>>, %arg4: memref<4x32x24xbf16, #tpu.memory_space<vmem>>, %arg5: memref<4x1x24xf32, #tpu.memory_space<vmem>>, %arg6: memref<4x8x32xbf16, #tpu.memory_space<vmem>>, %arg7: memref<1x32xf32, #tpu.memory_space<vmem>>, %arg8: memref<1x32xf32, #tpu.memory_space<vmem>>, %arg9: memref<1x32xf32, #tpu.memory_space<vmem>>, %arg10: memref<32x128xbf16, #tpu.memory_space<vmem>>, %arg11: memref<1x128xf32, #tpu.memory_space<vmem>>, %arg12: memref<128x32xbf16, #tpu.memory_space<vmem>>, %arg13: memref<1x32xf32, #tpu.memory_space<vmem>>, %arg14: memref<1x8x32xf32, #tpu.memory_space<vmem>>) attributes {dimension_semantics = [#tpu.dimension_semantics<parallel>], iteration_bounds = array<i64: 2>, scalar_prefetch = 0 : i64, scratch_operands = 0 : i64, tpu.core_type = #tpu.core_type<tc>, window_params = [{transform_indices = @transform_0, window_bounds = array<i64: 1, 8, 32>}, {pipeline_mode = #tpu.pipeline_mode<synchronous>, transform_indices = @transform_1, window_bounds = array<i64: 1, 32>}, {pipeline_mode = #tpu.pipeline_mode<synchronous>, transform_indices = @transform_2, window_bounds = array<i64: 1, 32>}, {pipeline_mode = #tpu.pipeline_mode<synchronous>, transform_indices = @transform_3, window_bounds = array<i64: 4, 32, 24>}, {pipeline_mode = #tpu.pipeline_mode<synchronous>, transform_indices = @transform_4, window_bounds = array<i64: 4, 1, 24>}, {pipeline_mode = #tpu.pipeline_mode<synchronous>, transform_indices = @transform_5, window_bounds = array<i64: 4, 8, 32>}, {pipeline_mode = #tpu.pipeline_mode<synchronous>, transform_indices = @transform_6, window_bounds = array<i64: 1, 32>}, {pipeline_mode = #tpu.pipeline_mode<synchronous>, transform_indices = @transform_7, window_bounds = array<i64: 1, 32>}, {pipeline_mode = #tpu.pipeline_mode<synchronous>, transform_indices = @transform_8, window_bounds = array<i64: 1, 32>}, {pipeline_mode = #tpu.pipeline_mode<synchronous>, transform_indices = @transform_9, window_bounds = array<i64: 32, 128>}, {pipeline_mode = #tpu.pipeline_mode<synchronous>, transform_indices = @transform_10, window_bounds = array<i64: 1, 128>}, {pipeline_mode = #tpu.pipeline_mode<synchronous>, transform_indices = @transform_11, window_bounds = array<i64: 128, 32>}, {pipeline_mode = #tpu.pipeline_mode<synchronous>, transform_indices = @transform_12, window_bounds = array<i64: 1, 32>}, {transform_indices = @transform_13, window_bounds = array<i64: 1, 8, 32>}]} {
    %c0 = arith.constant 0 : index
    %c0_0 = arith.constant 0 : index
    %c0_1 = arith.constant 0 : index
    %0 = vector.load %arg1[%c0, %c0_0, %c0_1] : memref<1x8x32xf32, #tpu.memory_space<vmem>>, vector<1x8x32xf32>
    %1 = vector.shape_cast %0 : vector<1x8x32xf32> to vector<8x32xf32>
    %c0_2 = arith.constant 0 : index
    %c0_3 = arith.constant 0 : index
    %2 = vector.load %arg2[%c0_2, %c0_3] : memref<1x32xf32, #tpu.memory_space<vmem>>, vector<1x32xf32>
    %3 = vector.shape_cast %2 : vector<1x32xf32> to vector<32xf32>
    %c0_4 = arith.constant 0 : index
    %c0_5 = arith.constant 0 : index
    %4 = vector.load %arg3[%c0_4, %c0_5] : memref<1x32xf32, #tpu.memory_space<vmem>>, vector<1x32xf32>
    %5 = vector.shape_cast %4 : vector<1x32xf32> to vector<32xf32>
    %c0_6 = arith.constant 0 : index
    %c0_7 = arith.constant 0 : index
    %6 = vector.load %arg8[%c0_6, %c0_7] : memref<1x32xf32, #tpu.memory_space<vmem>>, vector<1x32xf32>
    %7 = vector.shape_cast %6 : vector<1x32xf32> to vector<32xf32>
    %c0_8 = arith.constant 0 : index
    %c0_9 = arith.constant 0 : index
    %8 = vector.load %arg9[%c0_8, %c0_9] : memref<1x32xf32, #tpu.memory_space<vmem>>, vector<1x32xf32>
    %9 = vector.shape_cast %8 : vector<1x32xf32> to vector<32xf32>
    %c0_10 = arith.constant 0 : index
    %c0_11 = arith.constant 0 : index
    %10 = vector.load %arg7[%c0_10, %c0_11] : memref<1x32xf32, #tpu.memory_space<vmem>>, vector<1x32xf32>
    %11 = vector.shape_cast %10 : vector<1x32xf32> to vector<32xf32>
    %c0_12 = arith.constant 0 : index
    %c0_13 = arith.constant 0 : index
    %12 = vector.load %arg11[%c0_12, %c0_13] : memref<1x128xf32, #tpu.memory_space<vmem>>, vector<1x128xf32>
    %13 = vector.shape_cast %12 : vector<1x128xf32> to vector<128xf32>
    %c0_14 = arith.constant 0 : index
    %c0_15 = arith.constant 0 : index
    %14 = vector.load %arg13[%c0_14, %c0_15] : memref<1x32xf32, #tpu.memory_space<vmem>>, vector<1x32xf32>
    %15 = vector.shape_cast %14 : vector<1x32xf32> to vector<32xf32>
    %cst = arith.constant dense<0.000000e+00> : vector<8xf32>
    %16 = vector.multi_reduction <add>, %1, %cst [1] : vector<8x32xf32> to vector<8xf32>
    %17 = vector.shape_cast %16 : vector<8xf32> to vector<8x1xf32>
    %cst_16 = arith.constant 3.200000e+01 : f32
    %18 = vector.broadcast %cst_16 : f32 to vector<8x1xf32>
    %19 = arith.divf %17, %18 : vector<8x1xf32>
    %20 = vector.broadcast %19 : vector<8x1xf32> to vector<8x32xf32>
    %21 = arith.subf %1, %20 : vector<8x32xf32>
    %22 = arith.mulf %21, %21 : vector<8x32xf32>
    %cst_17 = arith.constant dense<0.000000e+00> : vector<8xf32>
    %23 = vector.multi_reduction <add>, %22, %cst_17 [1] : vector<8x32xf32> to vector<8xf32>
    %24 = vector.shape_cast %23 : vector<8xf32> to vector<8x1xf32>
    %cst_18 = arith.constant 3.200000e+01 : f32
    %25 = vector.broadcast %cst_18 : f32 to vector<8x1xf32>
    %26 = arith.divf %24, %25 : vector<8x1xf32>
    %27 = vector.broadcast %19 : vector<8x1xf32> to vector<8x32xf32>
    %28 = arith.subf %1, %27 : vector<8x32xf32>
    %cst_19 = arith.constant 9.99999974E-6 : f32
    %29 = vector.broadcast %cst_19 : f32 to vector<8x1xf32>
    %30 = arith.addf %26, %29 : vector<8x1xf32>
    %31 = math.rsqrt %30 : vector<8x1xf32>
    %32 = vector.broadcast %31 : vector<8x1xf32> to vector<8x32xf32>
    %33 = arith.mulf %28, %32 : vector<8x32xf32>
    %34 = vector.shape_cast %3 : vector<32xf32> to vector<1x32xf32>
    %35 = vector.broadcast %34 : vector<1x32xf32> to vector<8x32xf32>
    %36 = arith.mulf %33, %35 : vector<8x32xf32>
    %37 = vector.shape_cast %5 : vector<32xf32> to vector<1x32xf32>
    %38 = vector.broadcast %37 : vector<1x32xf32> to vector<8x32xf32>
    %39 = arith.addf %36, %38 : vector<8x32xf32>
    %40 = arith.truncf %39 : vector<8x32xf32> to vector<8x32xbf16>
    %41 = vector.shape_cast %40 : vector<8x32xbf16> to vector<1x8x32xbf16>
    %42 = vector.broadcast %41 : vector<1x8x32xbf16> to vector<4x8x32xbf16>
    %c0_20 = arith.constant 0 : index
    %c0_21 = arith.constant 0 : index
    %c0_22 = arith.constant 0 : index
    %43 = vector.load %arg4[%c0_20, %c0_21, %c0_22] : memref<4x32x24xbf16, #tpu.memory_space<vmem>>, vector<4x32x24xbf16>
    "tpu.trace_start"() <{level = 10 : i32, message = "hsd,hde->hse"}> : () -> ()
    %cst_23 = arith.constant dense<0.000000e+00> : vector<4x8x24xf32>
    %44 = tpu.matmul %42, %43, %cst_23 {dimension_numbers = #tpu.dot_dimension_numbers<[2], [1], [1], [2], [0, 0, 0, 1, 1, 2], [0], [0]>} : vector<4x8x32xbf16>, vector<4x32x24xbf16>, vector<4x8x24xf32> -> vector<4x8x24xf32>
    "tpu.trace_stop"() : () -> ()
    %c0_24 = arith.constant 0 : index
    %c0_25 = arith.constant 0 : index
    %c0_26 = arith.constant 0 : index
    %45 = vector.load %arg5[%c0_24, %c0_25, %c0_26] : memref<4x1x24xf32, #tpu.memory_space<vmem>>, vector<4x1x24xf32>
    %46 = vector.broadcast %45 : vector<4x1x24xf32> to vector<4x8x24xf32>
    %47 = arith.addf %44, %46 : vector<4x8x24xf32>
    %48 = vector.extract_strided_slice %47 {offsets = [0, 0, 0], sizes = [4, 8, 8], strides = [1, 1, 1]} : vector<4x8x24xf32> to vector<4x8x8xf32>
    %49 = arith.truncf %48 : vector<4x8x8xf32> to vector<4x8x8xbf16>
    %50 = vector.extract_strided_slice %47 {offsets = [0, 0, 8], sizes = [4, 8, 8], strides = [1, 1, 1]} : vector<4x8x24xf32> to vector<4x8x8xf32>
    %51 = arith.truncf %50 : vector<4x8x8xf32> to vector<4x8x8xbf16>
    %52 = vector.extract_strided_slice %47 {offsets = [0, 0, 16], sizes = [4, 8, 8], strides = [1, 1, 1]} : vector<4x8x24xf32> to vector<4x8x8xf32>
    %53 = arith.truncf %52 : vector<4x8x8xf32> to vector<4x8x8xbf16>
    "tpu.trace_start"() <{level = 10 : i32, message = "hqd,hkd->hqk"}> : () -> ()
    %cst_27 = arith.constant dense<0.000000e+00> : vector<4x8x8xf32>
    %54 = tpu.matmul %49, %51, %cst_27 {dimension_numbers = #tpu.dot_dimension_numbers<[2], [2], [1], [1], [0, 0, 0, 1, 1, 1], [0], [0]>} : vector<4x8x8xbf16>, vector<4x8x8xbf16>, vector<4x8x8xf32> -> vector<4x8x8xf32>
    "tpu.trace_stop"() : () -> ()
    %cst_28 = arith.constant dense<0xFF800000> : vector<4x8xf32>
    %55 = vector.multi_reduction <maximumf>, %54, %cst_28 [2] : vector<4x8x8xf32> to vector<4x8xf32>
    %56 = vector.shape_cast %55 : vector<4x8xf32> to vector<4x8x1xf32>
    %57 = vector.broadcast %56 : vector<4x8x1xf32> to vector<4x8x8xf32>
    %58 = arith.subf %54, %57 : vector<4x8x8xf32>
    %59 = math.exp %58 : vector<4x8x8xf32>
    %cst_29 = arith.constant dense<0.000000e+00> : vector<4x8xf32>
    %60 = vector.multi_reduction <add>, %59, %cst_29 [2] : vector<4x8x8xf32> to vector<4x8xf32>
    %61 = vector.shape_cast %60 : vector<4x8xf32> to vector<4x8x1xf32>
    %62 = tpu.reciprocal %61 {approx = true} : vector<4x8x1xf32> -> vector<4x8x1xf32>
    %63 = vector.broadcast %62 : vector<4x8x1xf32> to vector<4x8x8xf32>
    %64 = arith.mulf %59, %63 : vector<4x8x8xf32>
    %65 = arith.truncf %64 : vector<4x8x8xf32> to vector<4x8x8xbf16>
    "tpu.trace_start"() <{level = 10 : i32, message = "hqk,hkd->hqd"}> : () -> ()
    %cst_30 = arith.constant dense<0.000000e+00> : vector<4x8x8xf32>
    %66 = tpu.matmul %65, %53, %cst_30 {dimension_numbers = #tpu.dot_dimension_numbers<[2], [1], [1], [2], [0, 0, 0, 1, 1, 2], [0], [0]>} : vector<4x8x8xbf16>, vector<4x8x8xbf16>, vector<4x8x8xf32> -> vector<4x8x8xf32>
    "tpu.trace_stop"() : () -> ()
    %67 = arith.truncf %66 : vector<4x8x8xf32> to vector<4x8x8xbf16>
    %c0_31 = arith.constant 0 : index
    %c0_32 = arith.constant 0 : index
    %c0_33 = arith.constant 0 : index
    %68 = vector.load %arg6[%c0_31, %c0_32, %c0_33] : memref<4x8x32xbf16, #tpu.memory_space<vmem>>, vector<4x8x32xbf16>
    "tpu.trace_start"() <{level = 10 : i32, message = "hsd,hde->hse"}> : () -> ()
    %cst_34 = arith.constant dense<0.000000e+00> : vector<4x8x32xf32>
    %69 = tpu.matmul %67, %68, %cst_34 {dimension_numbers = #tpu.dot_dimension_numbers<[2], [1], [1], [2], [0, 0, 0, 1, 1, 2], [0], [0]>} : vector<4x8x8xbf16>, vector<4x8x32xbf16>, vector<4x8x32xf32> -> vector<4x8x32xf32>
    "tpu.trace_stop"() : () -> ()
    %cst_35 = arith.constant dense<0.000000e+00> : vector<8x32xf32>
    %70 = vector.multi_reduction <add>, %69, %cst_35 [0] : vector<4x8x32xf32> to vector<8x32xf32>
    %71 = vector.shape_cast %11 : vector<32xf32> to vector<1x32xf32>
    %72 = vector.broadcast %71 : vector<1x32xf32> to vector<8x32xf32>
    %73 = arith.addf %70, %72 : vector<8x32xf32>
    %74 = arith.addf %1, %73 : vector<8x32xf32>
    %cst_36 = arith.constant dense<0.000000e+00> : vector<8xf32>
    %75 = vector.multi_reduction <add>, %74, %cst_36 [1] : vector<8x32xf32> to vector<8xf32>
    %76 = vector.shape_cast %75 : vector<8xf32> to vector<8x1xf32>
    %cst_37 = arith.constant 3.200000e+01 : f32
    %77 = vector.broadcast %cst_37 : f32 to vector<8x1xf32>
    %78 = arith.divf %76, %77 : vector<8x1xf32>
    %79 = vector.broadcast %78 : vector<8x1xf32> to vector<8x32xf32>
    %80 = arith.subf %74, %79 : vector<8x32xf32>
    %81 = arith.mulf %80, %80 : vector<8x32xf32>
    %cst_38 = arith.constant dense<0.000000e+00> : vector<8xf32>
    %82 = vector.multi_reduction <add>, %81, %cst_38 [1] : vector<8x32xf32> to vector<8xf32>
    %83 = vector.shape_cast %82 : vector<8xf32> to vector<8x1xf32>
    %cst_39 = arith.constant 3.200000e+01 : f32
    %84 = vector.broadcast %cst_39 : f32 to vector<8x1xf32>
    %85 = arith.divf %83, %84 : vector<8x1xf32>
    %86 = vector.broadcast %78 : vector<8x1xf32> to vector<8x32xf32>
    %87 = arith.subf %74, %86 : vector<8x32xf32>
    %cst_40 = arith.constant 9.99999974E-6 : f32
    %88 = vector.broadcast %cst_40 : f32 to vector<8x1xf32>
    %89 = arith.addf %85, %88 : vector<8x1xf32>
    %90 = math.rsqrt %89 : vector<8x1xf32>
    %91 = vector.broadcast %90 : vector<8x1xf32> to vector<8x32xf32>
    %92 = arith.mulf %87, %91 : vector<8x32xf32>
    %93 = vector.shape_cast %7 : vector<32xf32> to vector<1x32xf32>
    %94 = vector.broadcast %93 : vector<1x32xf32> to vector<8x32xf32>
    %95 = arith.mulf %92, %94 : vector<8x32xf32>
    %96 = vector.shape_cast %9 : vector<32xf32> to vector<1x32xf32>
    %97 = vector.broadcast %96 : vector<1x32xf32> to vector<8x32xf32>
    %98 = arith.addf %95, %97 : vector<8x32xf32>
    %99 = arith.truncf %98 : vector<8x32xf32> to vector<8x32xbf16>
    %c0_41 = arith.constant 0 : index
    %c0_42 = arith.constant 0 : index
    %100 = vector.load %arg10[%c0_41, %c0_42] : memref<32x128xbf16, #tpu.memory_space<vmem>>, vector<32x128xbf16>
    %cst_43 = arith.constant dense<0.000000e+00> : vector<8x128xf32>
    %101 = tpu.matmul %99, %100, %cst_43 {dimension_numbers = #tpu.dot_dimension_numbers<[1], [0], [0], [1], [0, 0, 1, 1], [], []>} : vector<8x32xbf16>, vector<32x128xbf16>, vector<8x128xf32> -> vector<8x128xf32>
    %102 = vector.shape_cast %13 : vector<128xf32> to vector<1x128xf32>
    %103 = vector.broadcast %102 : vector<1x128xf32> to vector<8x128xf32>
    %104 = arith.addf %101, %103 : vector<8x128xf32>
    %cst_44 = arith.constant 1.702000e+00 : f32
    %105 = vector.broadcast %cst_44 : f32 to vector<8x128xf32>
    %106 = arith.mulf %105, %104 : vector<8x128xf32>
    %107 = arith.negf %106 : vector<8x128xf32>
    %108 = math.exp %107 : vector<8x128xf32>
    %cst_45 = arith.constant 1.000000e+00 : f32
    %109 = vector.broadcast %cst_45 : f32 to vector<8x128xf32>
    %110 = arith.addf %109, %108 : vector<8x128xf32>
    %111 = arith.divf %109, %110 : vector<8x128xf32>
    %112 = arith.mulf %104, %111 : vector<8x128xf32>
    %113 = arith.truncf %112 : vector<8x128xf32> to vector<8x128xbf16>
    %c0_46 = arith.constant 0 : index
    %c0_47 = arith.constant 0 : index
    %114 = vector.load %arg12[%c0_46, %c0_47] : memref<128x32xbf16, #tpu.memory_space<vmem>>, vector<128x32xbf16>
    %cst_48 = arith.constant dense<0.000000e+00> : vector<8x32xf32>
    %115 = tpu.matmul %113, %114, %cst_48 {dimension_numbers = #tpu.dot_dimension_numbers<[1], [0], [0], [1], [0, 0, 1, 1], [], []>} : vector<8x128xbf16>, vector<128x32xbf16>, vector<8x32xf32> -> vector<8x32xf32>
    %116 = vector.shape_cast %15 : vector<32xf32> to vector<1x32xf32>
    %117 = vector.broadcast %116 : vector<1x32xf32> to vector<8x32xf32>
    %118 = arith.addf %115, %117 : vector<8x32xf32>
    %119 = arith.addf %74, %118 : vector<8x32xf32>
    %c0_49 = arith.constant 0 : index
    %c0_50 = arith.constant 0 : index
    %c0_51 = arith.constant 0 : index
    %120 = vector.load %arg14[%c0_49, %c0_50, %c0_51] : memref<1x8x32xf32, #tpu.memory_space<vmem>>, vector<1x8x32xf32>
    %121 = vector.shape_cast %120 : vector<1x8x32xf32> to vector<8x32xf32>
    %122 = vector.shape_cast %119 : vector<8x32xf32> to vector<1x8x32xf32>
    tpu.vector_store %arg14[%c0_49, %c0_50, %c0_51], %122 {strides = array<i32>} : memref<1x8x32xf32, #tpu.memory_space<vmem>>, vector<1x8x32xf32>,
    return
  }
  func.func @transform_0(%arg0: i32) -> (i32, i32, i32) {
    %c0_i32 = arith.constant 0 : i32
    %c0_i32_0 = arith.constant 0 : i32
    %c0_i32_1 = arith.constant 0 : i32
    return %arg0, %c0_i32, %c0_i32_0 : i32, i32, i32
  }
  func.func @transform_1(%arg0: i32) -> (i32, i32) {
    %c0_i32 = arith.constant 0 : i32
    %c0_i32_0 = arith.constant 0 : i32
    %c0_i32_1 = arith.constant 0 : i32
    return %c0_i32, %c0_i32_0 : i32, i32
  }
  func.func @transform_2(%arg0: i32) -> (i32, i32) {
    %c0_i32 = arith.constant 0 : i32
    %c0_i32_0 = arith.constant 0 : i32
    %c0_i32_1 = arith.constant 0 : i32
    return %c0_i32, %c0_i32_0 : i32, i32
  }
  func.func @transform_3(%arg0: i32) -> (i32, i32, i32) {
    %c0_i32 = arith.constant 0 : i32
    %c0_i32_0 = arith.constant 0 : i32
    %c0_i32_1 = arith.constant 0 : i32
    %c0_i32_2 = arith.constant 0 : i32
    return %c0_i32, %c0_i32_0, %c0_i32_1 : i32, i32, i32
  }
  func.func @transform_4(%arg0: i32) -> (i32, i32, i32) {
    %c0_i32 = arith.constant 0 : i32
    %c0_i32_0 = arith.constant 0 : i32
    %c0_i32_1 = arith.constant 0 : i32
    %c0_i32_2 = arith.constant 0 : i32
    return %c0_i32, %c0_i32_0, %c0_i32_1 : i32, i32, i32
  }
  func.func @transform_5(%arg0: i32) -> (i32, i32, i32) {
    %c0_i32 = arith.constant 0 : i32
    %c0_i32_0 = arith.constant 0 : i32
    %c0_i32_1 = arith.constant 0 : i32
    %c0_i32_2 = arith.constant 0 : i32
    return %c0_i32, %c0_i32_0, %c0_i32_1 : i32, i32, i32
  }
  func.func @transform_6(%arg0: i32) -> (i32, i32) {
    %c0_i32 = arith.constant 0 : i32
    %c0_i32_0 = arith.constant 0 : i32
    %c0_i32_1 = arith.constant 0 : i32
    return %c0_i32, %c0_i32_0 : i32, i32
  }
  func.func @transform_7(%arg0: i32) -> (i32, i32) {
    %c0_i32 = arith.constant 0 : i32
    %c0_i32_0 = arith.constant 0 : i32
    %c0_i32_1 = arith.constant 0 : i32
    return %c0_i32, %c0_i32_0 : i32, i32
  }
  func.func @transform_8(%arg0: i32) -> (i32, i32) {
    %c0_i32 = arith.constant 0 : i32
    %c0_i32_0 = arith.constant 0 : i32
    %c0_i32_1 = arith.constant 0 : i32
    return %c0_i32, %c0_i32_0 : i32, i32
  }
  func.func @transform_9(%arg0: i32) -> (i32, i32) {
    %c0_i32 = arith.constant 0 : i32
    %c0_i32_0 = arith.constant 0 : i32
    %c0_i32_1 = arith.constant 0 : i32
    return %c0_i32, %c0_i32_0 : i32, i32
  }
  func.func @transform_10(%arg0: i32) -> (i32, i32) {
    %c0_i32 = arith.constant 0 : i32
    %c0_i32_0 = arith.constant 0 : i32
    %c0_i32_1 = arith.constant 0 : i32
    return %c0_i32, %c0_i32_0 : i32, i32
  }
  func.func @transform_11(%arg0: i32) -> (i32, i32) {
    %c0_i32 = arith.constant 0 : i32
    %c0_i32_0 = arith.constant 0 : i32
    %c0_i32_1 = arith.constant 0 : i32
    return %c0_i32, %c0_i32_0 : i32, i32
  }
  func.func @transform_12(%arg0: i32) -> (i32, i32) {
    %c0_i32 = arith.constant 0 : i32
    %c0_i32_0 = arith.constant 0 : i32
    %c0_i32_1 = arith.constant 0 : i32
    return %c0_i32, %c0_i32_0 : i32, i32
  }
  func.func @transform_13(%arg0: i32) -> (i32, i32, i32) {
    %c0_i32 = arith.constant 0 : i32
    %c0_i32_0 = arith.constant 0 : i32
    %c0_i32_1 = arith.constant 0 : i32
    return %arg0, %c0_i32, %c0_i32_0 : i32, i32, i32
  }
}

</mosaic_0001>

<bundles_post_ra>
// kernel: tpu_custom_call.1
= control target key start
LH: loop header
LB: loop body
LE: loop exit
PB: predicated region body
PF: predicated region fallthrough
CT: control target
= control target key end

     0   :  { %s2469_s0 = inlined_call_operand.vmem [shape: f32[2,8,32], index: 0, kind: input, shape index: {}]   ;;  %s2470_s1 = inlined_call_operand.vmem [shape: f32[1,32], index: 1, kind: input, shape index: {}]   ;;  %s2471_s2 = inlined_call_operand.vmem [shape: f32[1,32], index: 2, kind: input, shape index: {}]   ;;  %s2472_s3 = inlined_call_operand.vmem [shape: bf16[4,32,24], index: 3, kind: input, shape index: {}]   ;;  %s2473_s4 = inlined_call_operand.vmem [shape: f32[4,1,24], index: 4, kind: input, shape index: {}]   ;;  %s2474_s5 = inlined_call_operand.vmem [shape: bf16[4,8,32], index: 5, kind: input, shape index: {}]   ;;  %s2475_s6 = inlined_call_operand.vmem [shape: f32[1,32], index: 6, kind: input, shape index: {}]   ;;  %s2476_s7 = inlined_call_operand.vmem [shape: f32[1,32], index: 7, kind: input, shape index: {}]   ;;  %s2477_s8 = inlined_call_operand.vmem [shape: f32[1,32], index: 8, kind: input, shape index: {}]   ;;  %s2478_s9 = inlined_call_operand.vmem [shape: bf16[32,128], index: 9, kind: input, shape index: {}]   ;;  %s2479_s10 = inlined_call_operand.vmem [shape: f32[1,128], index: 10, kind: input, shape index: {}]   ;;  %s2480_s11 = inlined_call_operand.vmem [shape: bf16[128,32], index: 11, kind: input, shape index: {}]   ;;  %s2481_s12 = inlined_call_operand.vmem [shape: f32[1,32], index: 12, kind: input, shape index: {}]   ;;  %s2482_s13 = inlined_call_operand.hbm [shape: f32[2,8,32], index: 13, kind: output, shape index: {}]  }
   0x1   :  { %2483 = sst [smem:[#allocation5_spill]] %s2469_s0 }
   0x2   :  { %2484 = sst [smem:[#allocation6_spill]] %s2470_s1 }
   0x3   :  { %2485 = sst [smem:[#allocation7_spill]] %s2471_s2 }
   0x4   :  { %18 = vsyncpa [#allocation3], 0 }
   0x5   :  { %20 = vsyncpa [#allocation3 + $0x1], 0  ;;  %s2125_s25 = smov 0   ;;  %s2127_s26 = smov 0  }
   0x6   :  { %s2129_s27 = smov 0   ;;  %s2131_s28 = smov 0  }
   0x7 LB: > { %s2146_s29 = sadd.s32 4294967295, %s2048_s28   ;;  %s1666_s30 = sadd.s32 4294967294, %s2048_s28   ;;  %s2048_s28 = sphi %s2131_s28, %s2494_s28   ;;  %s2044_s27 = sphi %s2129_s27, %s2493_s27   ;;  %s2040_s26 = sphi %s2127_s26, %s2492_s26   ;;  %s2036_s25 = sphi %s2125_s25, %s2491_s25  }
   0x8   : > { %s2150_s14 = sadd.s32 1, %s2048_s28   ;;  %s311_s15 = sadd.s32 1, %s2044_s27 }
   0x9   : > { %s308_s16 = ssub.s32 %s2048_s28, %s2150_s14  ;;  %p321_p0 = scmp.ne.s32.totalorder %s2044_s27, %s2040_s26 }
   0xa   : > { %p309_p1 = scmp.eq.s32.totalorder %s308_s16, 0  ;;  %p322_p2 = scmp.eq.s32.totalorder %s2146_s29, 1 }
   0xb   : > { %p327_p3 = scmp.ne.s32.totalorder %s2040_s26, %s2036_s25  ;;  %p328_p4 = scmp.eq.s32.totalorder %s1666_s30, 1 }
   0xc   : > { %s2161_s17 = scalar_select %p309_p1, %s2044_s27, %s311_s15  }
   0xd   : > { %p2163_p5 = por %p322_p2, %p321_p0  ;;  %p2167_p6 = por %p328_p4, %p327_p3 }
   0xe   : > { %p1669_p7 = scmp.ge.s32.totalorder %s2048_s28, 1  ;;  %p389_p8 = scmp.lt.s32.totalorder %s2048_s28, 3 }
  0x10   : > { %p390_p9 = pnand %p1669_p7, %p389_p8 }
  0x11   : > { %p432_p10 = scmp.lt.s32.totalorder (!%p390_p9), %s2146_s29, 1  ;;  %s2488_s0 = sld [smem:[#allocation5_spill]] (!%p390_p9) }
  0x12   : > { %393 = sbr.rel (%p390_p9) target bundleno = 2334 (0x91e), region = 72  ;;  %s2489_s1 = sld [smem:[#allocation6_spill]] (!%p390_p9) }
  0x13   : > { %s2490_s2 = sld [smem:[#allocation7_spill]] (!%p390_p9)  ;;  %s2052_s23 = smov (!%p390_p9), 120  }
  0x14   : > { %s2053_s22 = smov (!%p390_p9), 112   ;;  %s429_s16 = sand.u32 (!%p390_p9), 1, %s2040_s26  }
  0x17   : > { %s433_s20 = scalar_select %p432_p10, %s2146_s29, 1  ;;  %vm445_vm0 = vcmask 261120   ;;  %v1946_v7 = vld [vmem:[%s2472_s3 + $0x8] sm:$0xff]   ;;  %v1947_v8 = vld [vmem:[%s2472_s3 + $0x38] sm:$0xff]   ;;  %v2050_v9 = vmov 0.0   ;;  %v1948_v10 = vld [vmem:[%s2472_s3] sm:$0xff]  }
  0x18   : > { %1771 = vmatprep.subr.bf16.mxu0 %v2050_v9  ;;  %1795 = vmatprep.subr.bf16.mxu1 %v2050_v9  ;;  %v1949_v11 = vld [vmem:[%s2472_s3 + $0x30] sm:$0xff]   ;;  %vm2051_vm1 = vmmov 0   ;;  %v1672_v16 = vld [vmem:[%s2489_s1] ss:$0 sm:$0xff]  ;;  %v1950_v21 = vld [vmem:[%s2472_s3 + $0x18] sm:$0xff]   ;;  %vm737_vm2 = vcmask 64512  }
  0x19   : > { %s1671_s21 = sshll.u32 %s433_s20, 3  ;;  %1772 = vmatpush3.bf16.msra.mxu0 %v1946_v7  ;;  %1796 = vmatpush3.bf16.msra.mxu1 %v1947_v8  ;;  %v1673_v18 = vld [vmem:[%s2490_s2] ss:$0 sm:$0xff]  ;;  %v1951_v23 = vld [vmem:[%s2472_s3 + $0x10] sm:$0xff]   ;;  %v1952_v24 = vld [vmem:[%s2472_s3 + $0x28] sm:$0xff]   ;;  %vm984_vm3 = vcmask 1043456  }
  0x1a   : > { %s435_s24 = scalar_lea.vmem %s2488_s0, %s1671_s21  ;;  %1773 = vmatprep.subr.bf16.mxu0 %v2050_v9  ;;  %1797 = vmatprep.subr.bf16.mxu1 %v2050_v9  ;;  %v1953_v25 = vld [vmem:[%s2472_s3 + $0x20] sm:$0xff]   ;;  %s1670_s20 = sshll.u32 %s429_s16, 3 }
  0x1b   : > { %v2178_v0 = vld [vmem:[%s435_s24] sm:$0xff]  ;;  %1775 = vmatprep.mubr.msk.bf16.mxu0 %vm2051_vm1, %v2050_v9  ;;  %1799 = vmatprep.mubr.msk.bf16.mxu1 %vm2051_vm1, %v2050_v9  ;;  %s431_s24 = scalar_lea.vmem [#allocation2], %s1670_s20  ;;  %s2054_s21 = smov [#allocation2]  }
  0x1c   : > { %v446_v1 = vsel %vm445_vm0, %v2178_v0, 0.0  ;;  %v1674_v26 = vld [vmem:[%s2473_s4] ss:$0 sm:$0xff]  ;;  %v1675_v37 = vld [vmem:[%s2473_s4 + $0x1] ss:$0 sm:$0xff]  ;;  %s1607_s30 = sshll.u32 %s431_s24, 4  ;;  %s2429_s30 = int_to_ptr.vmem [resolvable:$true] %s1607_s30 }
  0x1d   : > { %447 = vadd.xlane.f32.xlu0 %v446_v1  ;;  %1774 = vmatpush3.bf16.msra.mxu0 %v1948_v10  ;;  %v1677_v38 = vld [vmem:[%s2473_s4 + $0x3] ss:$0 sm:$0xff]  ;;  %v1676_v46 = vld [vmem:[%s2473_s4 + $0x2] ss:$0 sm:$0xff]  ;;  %s1988_s20 = scalar_lea.vmem %s2429_s30, 128 }
  0x1e   : > { %1798 = vmatpush3.bf16.msra.mxu1 %v1949_v11  ;;  %1779 = vmatprep.subr.bf16.mxu0 %v2050_v9  ;;  %p1989_p11 = scmp.ne.s32.totalorder %s2429_s30, %s1988_s20 }
  0x1f   : > { %1809 = vmatprep.subr.bf16.mxu1 %v2050_v9 }
  0x20   : > { %p1990_p12 = pnand %p1989_p11, %p2163_p5 }
  0x22   : > { %p1991_p13 = pneg %p1990_p12 }
  0xa6   : > { %v448_v2 = vpop.xlane.xlu0 %447 }
  0xa7   : > { %v450_v3 = vmul.f32 0.03125, %v448_v2 }
  0xa9   : > { %v451_v4 = vsub.f32 %v2178_v0, %v450_v3 }
  0xab   : > { %v452_v5 = vmul.f32 %v451_v4, %v451_v4 }
  0xad   : > { %v453_v6 = vsel %vm445_vm0, %v452_v5, 0.0 }
  0xae   : > { %454 = vadd.xlane.f32.xlu0 %v453_v6 }
 0x137   : > { %v455_v12 = vpop.xlane.xlu0 %454 }
 0x138   : > { %v456_v13 = vmul.f32 0.03125, %v455_v12 }
 0x13a   : > { %v457_v14 = vadd.f32 1e-05, %v456_v13 }
 0x13c   : > { %1964 = vrsqrt.f32 %v457_v14 }
 0x149   : > { %v1965_v15 = vpop.eup %1964 }
 0x14a   : > { %v459_v17 = vmul.f32 %v1965_v15, %v451_v4 }
 0x14c   : > { %v466_v19 = vmul.f32 %v1672_v16, %v459_v17 }
 0x14e   : > { %v473_v20 = vadd.f32 %v1673_v18, %v466_v19 }
 0x150   : > { %v474_v22 = vpack.c.bf16 %v473_v20, %v473_v20 }
 0x152   : > { %1776 = vmatmul.mubr.msk.bf16.vlgmr.msra.gmra.mxu0 %vm445_vm0, %v474_v22  ;;  %1800 = vmatmul.mubr.msk.bf16.vlgmr.msra.gmra.mxu1 %vm445_vm0, %v474_v22 }
 0x153   : > { %1780 = vmatpush3.bf16.msra.mxu0 %v1950_v21  ;;  %1783 = vmatprep.mubr.msk.bf16.mxu0 %vm2051_vm1, %v2050_v9 }
 0x154   : > { %1781 = vmatprep.subr.bf16.mxu0 %v2050_v9  ;;  %1811 = vmatprep.mubr.msk.bf16.mxu1 %vm2051_vm1, %v2050_v9 }
 0x157   : > { %1782 = vmatpush3.bf16.msra.mxu0 %v1951_v23 }
 0x158   : > { %1787 = vmatprep.subr.bf16.mxu0 %v2050_v9 }
 0x15a   : > { %1784 = vmatmul.mubr.msk.bf16.vlgmr.msra.gmra.mxu0 %vm445_vm0, %v474_v22 }
 0x15b   : > { %1788 = vmatpush3.bf16.msra.mxu0 %v1952_v24  ;;  %1791 = vmatprep.mubr.msk.bf16.mxu0 %vm2051_vm1, %v2050_v9 }
 0x15c   : > { %1789 = vmatprep.subr.bf16.mxu0 %v2050_v9 }
 0x15f   : > { %1790 = vmatpush3.bf16.msra.mxu0 %v1953_v25 }
 0x160   : > { %1803 = vmatprep.subr.bf16.mxu0 %v2050_v9 }
 0x162   : > { %1792 = vmatmul.mubr.msk.bf16.vlgmr.msra.gmra.mxu0 %vm445_vm0, %v474_v22 }
 0x163   : > { %1805 = vmatprep.mubr.msk.bf16.mxu0 %vm2051_vm1, %v2050_v9 }
 0x212   : > { %v568_v27 = vpop.f32.mrf.mxu0  ;;  %v724_v28 = vpop.f32.mrf.mxu1 }
 0x213   : > { %v569_v29 = vadd.f32 %v1674_v26, %v568_v27  ;;  %v725_v42 = vadd.f32 %v1677_v38, %v724_v28 }
 0x214   : > { %v1777_v30 = vpop.f32.mrf.mxu0  ;;  %v1801_v31 = vpop.f32.mrf.mxu1 }
 0x215   : > { %v2243_v32 = vpack.c.bf16 %v569_v29, %v569_v29  ;;  %v2258_v47 = vpack.c.bf16 %v725_v42, %v725_v42 }
 0x216   : > { %v571_v33 = vpop.f32.mrf.mxu0  ;;  %v727_v34 = vpop.f32.mrf.mxu1 }
 0x217   : > { %735 = vrot.lane.b32.xlu1 %v2243_v32, %s2052_s23 }
 0x218   : > { %v1778_v35 = vpop.f32.mrf.mxu0  ;;  %v1802_v36 = vpop.f32.mrf.mxu1 }
 0x21a   : > { %v620_v39 = vpop.f32.mrf.mxu0 }
 0x21b   : > { %v621_v40 = vadd.f32 %v1675_v37, %v620_v39 }
 0x21c   : > { %v1785_v41 = vpop.f32.mrf.mxu0 }
 0x21d   : > { %v2252_v43 = vpack.c.bf16 %v621_v40, %v621_v40 }
 0x21e   : > { %v623_v44 = vpop.f32.mrf.mxu0 }
 0x21f   : > { %785 = vrot.lane.b32.xlu1 %v2252_v43, %s2052_s23 }
 0x220   : > { %v1786_v45 = vpop.f32.mrf.mxu0 }
 0x222   : > { %v672_v48 = vpop.f32.mrf.mxu0 }
 0x223   : > { %v673_v49 = vadd.f32 %v1676_v46, %v672_v48  ;;  %883 = vrot.lane.b32.xlu1 %v2258_v47, %s2052_s23 }
 0x224   : > { %v1793_v50 = vpop.f32.mrf.mxu0 }
 0x225   : > { %v2261_v51 = vpack.c.bf16 %v673_v49, %v673_v49 }
 0x226   : > { %v675_v52 = vpop.f32.mrf.mxu0 }
 0x227   : > { %834 = vrot.lane.b32.xlu0 %v2261_v51, %s2052_s23  ;;  %s1720_s23 = sshll.u32 %s2146_s29, 7  ;;  %s1594_s29 = scalar_lea.sflag [#allocation3], %s429_s16 }
 0x228   : > { %v1794_v53 = vpop.f32.mrf.mxu0  ;;  %s2427_s1 = scalar_lea.hbm %s2482_s13, %s1720_s23 }
 0x289   : > { %v736_v54 = vpop.permute.xlu1 %735 }
 0x28a   : > { %v742_v55 = vsel %vm737_vm2, %v736_v54, 0 }
 0x28b   : > { %1804 = vmatpush3.bf16.xpose.msra.mxu0 %v742_v55 }
 0x28c   : > { %1815 = vmatprep.subr.bf16.mxu0 %v2050_v9 }
 0x291   : > { %v786_v56 = vpop.permute.xlu1 %785 }
 0x292   : > { %v791_v57 = vsel %vm737_vm2, %v786_v56, 0  ;;  %1806 = vmatmul.mubr.msk.bf16.vlgmr.msra.gmra.mxu0 %vm737_vm2, %v2243_v32 }
 0x293   : > { %1810 = vmatpush3.bf16.xpose.msra.mxu1 %v791_v57  ;;  %1817 = vmatprep.mubr.msk.bf16.mxu0 %vm2051_vm1, %v2050_v9 }
 0x294   : > { %1821 = vmatprep.subr.bf16.mxu1 %v2050_v9 }
 0x295   : > { %v884_v58 = vpop.permute.xlu1 %883 }
 0x296   : > { %v889_v60 = vsel %vm737_vm2, %v884_v58, 0 }
 0x299   : > { %v835_v59 = vpop.permute.xlu0 %834 }
 0x29a   : > { %v840_v61 = vsel %vm737_vm2, %v835_v59, 0  ;;  %1812 = vmatmul.mubr.msk.bf16.vlgmr.msra.gmra.mxu1 %vm737_vm2, %v2252_v43 }
 0x29b   : > { %1816 = vmatpush3.bf16.xpose.msra.mxu0 %v840_v61  ;;  %1822 = vmatpush3.bf16.xpose.msra.mxu1 %v889_v60 }
 0x29c   : > { %1823 = vmatprep.mubr.msk.bf16.mxu1 %vm2051_vm1, %v2050_v9  ;;  %1827 = vmatprep.subr.bf16.mxu0 %v2050_v9 }
 0x29d   : > { %1833 = vmatprep.subr.bf16.mxu1 %v2050_v9 }
 0x2a2   : > { %1818 = vmatmul.mubr.msk.bf16.vlgmr.msra.gmra.mxu0 %vm737_vm2, %v2261_v51  ;;  %1824 = vmatmul.mubr.msk.bf16.vlgmr.msra.gmra.mxu1 %vm737_vm2, %v2258_v47 }
 0x2a3   : > { %1829 = vmatprep.mubr.msk.bf16.mxu0 %vm2051_vm1, %v2050_v9  ;;  %1835 = vmatprep.mubr.msk.bf16.mxu1 %vm2051_vm1, %v2050_v9 }
 0x352   : > { %v778_v62 = vpop.f32.mrf.mxu0 }
 0x353   : > { %v931_v63 = vsel %vm737_vm2, %v778_v62, -inf }
 0x354   : > { %932 = vmax.xlane.f32.xlu1 %v931_v63  ;;  %v1807_v1 = vpop.f32.mrf.mxu0 }
 0x355   : > { %v1176_v1 = vld [vmem:[%s2474_s5] sm:$0xf] }
 0x356   : > { %v781_v2 = vpop.f32.mrf.mxu0 }
 0x357   : > { %v1184_v2 = vsel %vm984_vm3, %v1176_v1, 0 }
 0x358   : > { %v1808_v3 = vpop.f32.mrf.mxu0 }
 0x359   : > { %v1177_v3 = vld [vmem:[%s2474_s5 + $0x4] sm:$0xf] }
 0x35a   : > { %v827_v4 = vpop.f32.mrf.mxu1 }
 0x35b   : > { %v934_v5 = vsel %vm737_vm2, %v827_v4, -inf }
 0x35c   : > { %v1813_v6 = vpop.f32.mrf.mxu1  ;;  %935 = vmax.xlane.f32.xlu0 %v934_v5  ;;  %v1178_v5 = vld [vmem:[%s2474_s5 + $0x8] sm:$0xf] }
 0x35e   : > { %v830_v7 = vpop.f32.mrf.mxu1 }
 0x360   : > { %v1814_v8 = vpop.f32.mrf.mxu1 }
 0x361   : > { %v1276_v8 = vsel %vm984_vm3, %v1178_v5, 0 }
 0x362   : > { %v876_v10 = vpop.f32.mrf.mxu0  ;;  %v925_v11 = vpop.f32.mrf.mxu1 }
 0x363   : > { %v937_v12 = vsel %vm737_vm2, %v876_v10, -inf  ;;  %v940_v17 = vsel %vm737_vm2, %v925_v11, -inf }
 0x364   : > { %v1825_v13 = vpop.f32.mrf.mxu1  ;;  %938 = vmax.xlane.f32.xlu1 %v937_v12  ;;  %v1819_v14 = vpop.f32.mrf.mxu0 }
 0x365   : > { %v1179_v13 = vld [vmem:[%s2474_s5 + $0xc] sm:$0xf] }
 0x366   : > { %v879_v15 = vpop.f32.mrf.mxu0  ;;  %v928_v16 = vpop.f32.mrf.mxu1 }
 0x367   : > { %v1322_v16 = vsel %vm984_vm3, %v1179_v13, 0  ;;  %v1958_v13 = vld [vmem:[%s2480_s11 + $0x28] sm:$0xff]  }
 0x368   : > { %v1826_v18 = vpop.f32.mrf.mxu1  ;;  %941 = vmax.xlane.f32.xlu1 %v940_v17  ;;  %v1820_v19 = vpop.f32.mrf.mxu0 }
 0x372   : > { %979 = vrot.lane.b32.xlu0 %v2243_v32, %s2053_s22 }
 0x379   : > { %1028 = vrot.lane.b32.xlu1 %v2252_v43, %s2053_s22 }
 0x3dd   : > { %v933_v20 = vpop.xlane.xlu1 %932 }
 0x3de   : > { %v943_v21 = vsub.f32 %v778_v62, %v933_v20 }
 0x3e0   : > { %v947_v22 = vmul.f32 1.442695, %v943_v21 }
 0x3e2   : > { %1966 = vpow2.f32 %v947_v22 }
 0x3e5   : > { %v936_v23 = vpop.xlane.xlu0 %935 }
 0x3e6   : > { %v944_v24 = vsub.f32 %v827_v4, %v936_v23  ;;  %v1230_v4 = vsel %vm984_vm3, %v1177_v3, 0 }
 0x3e8   : > { %v949_v25 = vmul.f32 1.442695, %v944_v24 }
 0x3e9   : > { %v980_v26 = vpop.permute.xlu0 %979 }
 0x3ea   : > { %1968 = vpow2.f32 %v949_v25  ;;  %v986_v27 = vsel %vm984_vm3, %v980_v26, 0 }
 0x3eb   : > { %1828 = vmatpush3.bf16.msra.mxu0 %v986_v27 }
 0x3ec   : > { %1839 = vmatprep.subr.bf16.mxu0 %v2050_v9 }
 0x3ed   : > { %v939_v28 = vpop.xlane.xlu1 %938 }
 0x3ee   : > { %v945_v29 = vsub.f32 %v876_v10, %v939_v28 }
 0x3ef   : > { %v1967_v30 = vpop.eup %1966 }
 0x3f0   : > { %v951_v31 = vmul.f32 1.442695, %v945_v29  ;;  %v955_v32 = vsel %vm737_vm2, %v1967_v30, 0.0 }
 0x3f1   : > { %956 = vadd.xlane.f32.xlu1 %v955_v32  ;;  %v942_v33 = vpop.xlane.xlu1 %941 }
 0x3f2   : > { %1970 = vpow2.f32 %v951_v31  ;;  %v946_v34 = vsub.f32 %v925_v11, %v942_v33 }
 0x3f4   : > { %v953_v35 = vmul.f32 1.442695, %v946_v34 }
 0x3f5   : > { %v1029_v36 = vpop.permute.xlu1 %1028 }
 0x3f6   : > { %1972 = vpow2.f32 %v953_v35  ;;  %v1034_v37 = vsel %vm984_vm3, %v1029_v36, 0 }
 0x3f7   : > { %v1969_v38 = vpop.eup %1968  ;;  %1834 = vmatpush3.bf16.msra.mxu1 %v1034_v37 }
 0x3f8   : > { %v958_v39 = vsel %vm737_vm2, %v1969_v38, 0.0  ;;  %1845 = vmatprep.subr.bf16.mxu1 %v2050_v9 }
 0x3f9   : > { %959 = vadd.xlane.f32.xlu1 %v958_v39 }
 0x3ff   : > { %v1971_v40 = vpop.eup %1970 }
 0x400   : > { %v961_v41 = vsel %vm737_vm2, %v1971_v40, 0.0 }
 0x401   : > { %962 = vadd.xlane.f32.xlu0 %v961_v41 }
 0x403   : > { %v1973_v42 = vpop.eup %1972 }
 0x404   : > { %v964_v43 = vsel %vm737_vm2, %v1973_v42, 0.0 }
 0x405   : > { %965 = vadd.xlane.f32.xlu1 %v964_v43 }
 0x416   : > { %1076 = vrot.lane.b32.xlu1 %v2261_v51, %s2053_s22 }
 0x417   : > { %1124 = vrot.lane.b32.xlu0 %v2258_v47, %s2053_s22  ;;  %s1992_s22 = sshll.u32 %s2054_s21, 4  ;;  %s1993_s22 = int_to_ptr.vmem [resolvable:$false] %s1992_s22 }
 0x418   : > { %s1994_s0 = scalar_lea.vmem %s1993_s22, 256  ;;  %p1995_p0 = scmp.lt.s32.totalorder %s2429_s30, %s1993_s22 }
 0x419   : > { %p1996_p1 = scmp.lt.s32.totalorder %s1994_s0, %s1988_s20 }
 0x41b   : > { %p1997_p2 = por %p1996_p1, %p1995_p0 }
 0x41d   : > { %p1998_p3 = pnand %p1997_p2, %p1991_p13 }
 0x47a   : > { %v957_v44 = vpop.xlane.xlu1 %956 }
 0x47b   : > { %1974 = vrcp.f32 %v957_v44 }
 0x482   : > { %v960_v45 = vpop.xlane.xlu1 %959 }
 0x483   : > { %1976 = vrcp.f32 %v960_v45 }
 0x488   : > { %v1975_v46 = vpop.eup %1974 }
 0x489   : > { %v971_v48 = vmul.f32 %v1975_v46, %v1967_v30 }
 0x48a   : > { %v963_v49 = vpop.xlane.xlu0 %962 }
 0x48b   : > { %1978 = vrcp.f32 %v963_v49  ;;  %v975_v50 = vpack.c.bf16 %v971_v48, %v971_v48  ;;  %v1702_v48 = vld [vmem:[%s2475_s6] ss:$0 sm:$0xff] }
 0x48d   : > { %1830 = vmatmul.mubr.msk.bf16.vlgmr.msra.gmra.mxu0 %vm737_vm2, %v975_v50 }
 0x48e   : > { %v966_v52 = vpop.xlane.xlu1 %965  ;;  %1841 = vmatprep.mubr.msk.bf16.mxu0 %vm2051_vm1, %v2050_v9  ;;  %v1125_v54 = vpop.permute.xlu0 %1124 }
 0x48f   : > { %1980 = vrcp.f32 %v966_v52  ;;  %v1130_v57 = vsel %vm984_vm3, %v1125_v54, 0 }
 0x490   : > { %v1977_v51 = vpop.eup %1976 }
 0x491   : > { %v972_v53 = vmul.f32 %v1977_v51, %v1969_v38 }
 0x492   : > { %v1077_v47 = vpop.permute.xlu1 %1076 }
 0x493   : > { %v1082_v55 = vsel %vm984_vm3, %v1077_v47, 0  ;;  %v976_v56 = vpack.c.bf16 %v972_v53, %v972_v53 }
 0x494   : > { %1840 = vmatpush3.bf16.msra.mxu0 %v1082_v55 }
 0x495   : > { %1836 = vmatmul.mubr.msk.bf16.vlgmr.msra.gmra.mxu1 %vm737_vm2, %v976_v56  ;;  %1851 = vmatprep.subr.bf16.mxu0 %v2050_v9 }
 0x496   : > { %1846 = vmatpush3.bf16.msra.mxu1 %v1130_v57  ;;  %1847 = vmatprep.mubr.msk.bf16.mxu1 %vm2051_vm1, %v2050_v9 }
 0x497   : > { %1857 = vmatprep.subr.bf16.mxu1 %v2050_v9 }
 0x498   : > { %v1979_v58 = vpop.eup %1978 }
 0x499   : > { %v973_v59 = vmul.f32 %v1979_v58, %v1971_v40 }
 0x49b   : > { %v977_v60 = vpack.c.bf16 %v973_v59, %v973_v59 }
 0x49c   : > { %v1981_v61 = vpop.eup %1980 }
 0x49d   : > { %1842 = vmatmul.mubr.msk.bf16.vlgmr.msra.gmra.mxu0 %vm737_vm2, %v977_v60  ;;  %v974_v62 = vmul.f32 %v1981_v61, %v1973_v42 }
 0x49e   : > { %1853 = vmatprep.mubr.msk.bf16.mxu0 %vm2051_vm1, %v2050_v9  ;;  %1852 = vmatpush3.bf16.msra.mxu0 %v1184_v2 }
 0x49f   : > { %v978_v63 = vpack.c.bf16 %v974_v62, %v974_v62  ;;  %1863 = vmatprep.subr.bf16.mxu0 %v2050_v9  ;;  %v1954_v62 = vld [vmem:[%s2478_s9 + $0x8] sm:$0xff]  }
 0x4a1   : > { %1848 = vmatmul.mubr.msk.bf16.vlgmr.msra.gmra.mxu1 %vm737_vm2, %v978_v63 }
 0x4a2   : > { %1859 = vmatprep.mubr.msk.bf16.mxu1 %vm2051_vm1, %v2050_v9  ;;  %1858 = vmatpush3.bf16.msra.mxu1 %v1230_v4  ;;  %v1703_v4 = vld [vmem:[%s2476_s7] ss:$0 sm:$0xff] }
 0x4a3   : > { %1869 = vmatprep.subr.bf16.mxu1 %v2050_v9 }
 0x54d   : > { %v1022_v6 = vpop.f32.mrf.mxu0 }
 0x54e   : > { %v1172_v7 = vpack.c.bf16 %v1022_v6, %v1022_v6  ;;  %v1704_v6 = vld [vmem:[%s2477_s8] ss:$0 sm:$0xff] }
 0x54f   : > { %v1831_v10 = vpop.f32.mrf.mxu0 }
 0x550   : > { %1854 = vmatmul.mubr.msk.bf16.vlgmr.msra.gmra.mxu0 %vm737_vm2, %v1172_v7 }
 0x551   : > { %v1025_v11 = vpop.f32.mrf.mxu0  ;;  %1864 = vmatpush3.bf16.msra.mxu0 %v1276_v8  ;;  %1865 = vmatprep.mubr.msk.bf16.mxu0 %vm2051_vm1, %v2050_v9 }
 0x552   : > { %1875 = vmatprep.subr.bf16.mxu0 %v2050_v9  ;;  %v1956_v11 = vld [vmem:[%s2480_s11 + $0x38] sm:$0xff]  }
 0x553   : > { %v1832_v12 = vpop.f32.mrf.mxu0 }
 0x554   : > { %v1957_v12 = vld [vmem:[%s2480_s11 + $0x30] sm:$0xff]  }
 0x555   : > { %v1070_v14 = vpop.f32.mrf.mxu1 }
 0x556   : > { %v1173_v15 = vpack.c.bf16 %v1070_v14, %v1070_v14  ;;  %v1959_v14 = vld [vmem:[%s2480_s11 + $0x20] sm:$0xff]  }
 0x557   : > { %v1837_v17 = vpop.f32.mrf.mxu1 }
 0x558   : > { %1860 = vmatmul.mubr.msk.bf16.vlgmr.msra.gmra.mxu1 %vm737_vm2, %v1173_v15  ;;  %v1960_v15 = vld [vmem:[%s2480_s11 + $0x18] sm:$0xff]   ;;  %v1962_v17 = vld [vmem:[%s2480_s11 + $0x8] sm:$0xff]  }
 0x559   : > { %v1073_v18 = vpop.f32.mrf.mxu1  ;;  %1870 = vmatpush3.bf16.msra.mxu1 %v1322_v16  ;;  %1871 = vmatprep.mubr.msk.bf16.mxu1 %vm2051_vm1, %v2050_v9  ;;  %v1961_v16 = vld [vmem:[%s2480_s11 + $0x10] sm:$0xff]  }
 0x55a   : > { %1883 = vmatprep.subr.bf16.mxu1 %v2050_v9  ;;  %v1963_v18 = vld [vmem:[%s2480_s11] sm:$0xff]  }
 0x55b   : > { %v1838_v19 = vpop.f32.mrf.mxu1 }
 0x55c   : > { %v1705_v19 = vld [vmem:[%s2479_s10] ss:$0 sm:$0xff] }
 0x55d   : > { %v1118_v20 = vpop.f32.mrf.mxu0 }
 0x55e   : > { %v1174_v21 = vpack.c.bf16 %v1118_v20, %v1118_v20 }
 0x55f   : > { %v1843_v22 = vpop.f32.mrf.mxu0 }
 0x560   : > { %1866 = vmatmul.mubr.msk.bf16.vlgmr.msra.gmra.mxu0 %vm737_vm2, %v1174_v21 }
 0x561   : > { %v1121_v23 = vpop.f32.mrf.mxu0  ;;  %v1166_v24 = vpop.f32.mrf.mxu1  ;;  %1879 = vmatprep.mubr.msk.bf16.mxu0 %vm2051_vm1, %v2050_v9  ;;  %1876 = vmatpush3.bf16.msra.mxu0 %v1954_v62 }
 0x562   : > { %v1175_v25 = vpack.c.bf16 %v1166_v24, %v1166_v24  ;;  %1877 = vmatprep.subr.bf16.mxu0 %v2050_v9 }
 0x563   : > { %v1844_v26 = vpop.f32.mrf.mxu0  ;;  %v1849_v27 = vpop.f32.mrf.mxu1 }
 0x564   : > { %1872 = vmatmul.mubr.msk.bf16.vlgmr.msra.gmra.mxu1 %vm737_vm2, %v1175_v25 }
 0x565   : > { %v1169_v28 = vpop.f32.mrf.mxu1  ;;  %1899 = vmatprep.mubr.msk.bf16.mxu1 %vm2051_vm1, %v2050_v9  ;;  %1884 = vmatpush3.bf16.msra.mxu1 %v1956_v11 }
 0x566   : > { %1885 = vmatprep.subr.bf16.mxu1 %v2050_v9 }
 0x567   : > { %v1850_v29 = vpop.f32.mrf.mxu1 }
 0x569   : > { %1886 = vmatpush3.bf16.msra.mxu1 %v1957_v12 }
 0x56a   : > { %1887 = vmatprep.subr.bf16.mxu1 %v2050_v9 }
 0x56d   : > { %1888 = vmatpush3.bf16.msra.mxu1 %v1958_v13 }
 0x56e   : > { %1889 = vmatprep.subr.bf16.mxu1 %v2050_v9 }
 0x571   : > { %1890 = vmatpush3.bf16.msra.mxu1 %v1959_v14 }
 0x572   : > { %1891 = vmatprep.subr.bf16.mxu1 %v2050_v9 }
 0x575   : > { %1892 = vmatpush3.bf16.msra.mxu1 %v1960_v15 }
 0x576   : > { %1893 = vmatprep.subr.bf16.mxu1 %v2050_v9 }
 0x579   : > { %1894 = vmatpush3.bf16.msra.mxu1 %v1961_v16 }
 0x57a   : > { %1895 = vmatprep.subr.bf16.mxu1 %v2050_v9 }
 0x57d   : > { %1896 = vmatpush3.bf16.msra.mxu1 %v1962_v17 }
 0x57e   : > { %1897 = vmatprep.subr.bf16.mxu1 %v2050_v9 }
 0x581   : > { %1898 = vmatpush3.bf16.msra.mxu1 %v1963_v18 }
 0x610   : > { %v1220_v30 = vpop.f32.mrf.mxu0 }
 0x611   : > { %v1364_v40 = vsel %vm445_vm0, %v1220_v30, 0.0 }
 0x612   : > { %v1855_v31 = vpop.f32.mrf.mxu0 }
 0x613   : > { %v1710_v31 = vld [vmem:[%s2481_s12] ss:$0 sm:$0xff] }
 0x614   : > { %v1223_v32 = vpop.f32.mrf.mxu0 }
 0x616   : > { %v1856_v33 = vpop.f32.mrf.mxu0 }
 0x618   : > { %v1266_v34 = vpop.f32.mrf.mxu1 }
 0x619   : > { %v1365_v38 = vsel %vm445_vm0, %v1266_v34, 0.0 }
 0x61a   : > { %v1861_v35 = vpop.f32.mrf.mxu1  ;;  %v1366_v42 = vadd.f32 %v1365_v38, %v1364_v40 }
 0x61c   : > { %v1269_v36 = vpop.f32.mrf.mxu1 }
 0x61e   : > { %v1862_v37 = vpop.f32.mrf.mxu1 }
 0x620   : > { %v1312_v39 = vpop.f32.mrf.mxu0 }
 0x621   : > { %v1367_v41 = vsel %vm445_vm0, %v1312_v39, 0.0 }
 0x622   : > { %v1867_v43 = vpop.f32.mrf.mxu0  ;;  %v1368_v44 = vadd.f32 %v1367_v41, %v1366_v42 }
 0x624   : > { %v1315_v45 = vpop.f32.mrf.mxu0  ;;  %v1358_v46 = vpop.f32.mrf.mxu1 }
 0x625   : > { %v1369_v49 = vsel %vm445_vm0, %v1358_v46, 0.0 }
 0x626   : > { %v1370_v50 = vadd.f32 %v1369_v49, %v1368_v44  ;;  %v1868_v52 = vpop.f32.mrf.mxu0  ;;  %v1873_v51 = vpop.f32.mrf.mxu1 }
 0x628   : > { %v1377_v53 = vadd.f32 %v1702_v48, %v1370_v50  ;;  %v1361_v54 = vpop.f32.mrf.mxu1 }
 0x62a   : > { %v1874_v47 = vpop.f32.mrf.mxu1  ;;  %v2364_v55 = vadd.f32 %v1377_v53, %v2178_v0  ;;  %v1955_v0 = vld [vmem:[%s2478_s9] sm:$0xff]  }
 0x62b   : > { %1878 = vmatpush3.bf16.msra.mxu0 %v1955_v0 }
 0x62c   : > { %v1379_v56 = vsel %vm445_vm0, %v2364_v55, 0.0 }
 0x62d   : > { %1380 = vadd.xlane.f32.xlu1 %v1379_v56 }
 0x6b6   : > { %v1381_v57 = vpop.xlane.xlu1 %1380 }
 0x6b7   : > { %v1382_v58 = vmul.f32 0.03125, %v1381_v57 }
 0x6b9   : > { %v1383_v59 = vsub.f32 %v2364_v55, %v1382_v58 }
 0x6bb   : > { %v1384_v60 = vmul.f32 %v1383_v59, %v1383_v59 }
 0x6bd   : > { %v1385_v61 = vsel %vm445_vm0, %v1384_v60, 0.0 }
 0x6be   : > { %1386 = vadd.xlane.f32.xlu0 %v1385_v61 }
 0x747   : > { %v1387_v63 = vpop.xlane.xlu0 %1386 }
 0x748   : > { %v1388_v1 = vmul.f32 0.03125, %v1387_v63 }
 0x74a   : > { %v1389_v2 = vadd.f32 1e-05, %v1388_v1 }
 0x74c   : > { %1982 = vrsqrt.f32 %v1389_v2 }
 0x759   : > { %v1983_v3 = vpop.eup %1982 }
 0x75a   : > { %v1391_v5 = vmul.f32 %v1983_v3, %v1383_v59 }
 0x75c   : > { %v1398_v7 = vmul.f32 %v1703_v4, %v1391_v5 }
 0x75e   : > { %v1405_v8 = vadd.f32 %v1704_v6, %v1398_v7 }
 0x760   : > { %v1406_v10 = vpack.c.bf16 %v1405_v8, %v1405_v8 }
 0x762   : > { %1880 = vmatmul.mubr.msk.bf16.vlgmr.msra.gmra.mxu0 %vm445_vm0, %v1406_v10 }
 0x822   : > { %v1466_v20 = vpop.f32.mrf.mxu0 }
 0x823   : > { %v1467_v21 = vadd.f32 %v1705_v19, %v1466_v20 }
 0x824   : > { %v1881_v22 = vpop.f32.mrf.mxu0 }
 0x825   : > { %v1709_v23 = vmul.f32 -1.702, %v1467_v21 }
 0x826   : > { %v1469_v24 = vpop.f32.mrf.mxu0 }
 0x827   : > { %v1474_v25 = vmul.f32 1.442695, %v1709_v23 }
 0x828   : > { %v1882_v26 = vpop.f32.mrf.mxu0 }
 0x829   : > { %1984 = vpow2.f32 %v1474_v25 }
 0x836   : > { %v1985_v9 = vpop.eup %1984 }
 0x837   : > { %v1476_v27 = vadd.f32 1.0, %v1985_v9 }
 0x839   : > { %1986 = vrcp.f32 %v1476_v27 }
 0x846   : > { %v1987_v28 = vpop.eup %1986 }
 0x847   : > { %v1479_v29 = vmul.f32 %v1987_v28, %v1467_v21 }
 0x849   : > { %v1480_v30 = vpack.c.bf16 %v1479_v29, %v1479_v29 }
 0x84b   : > { %1900 = vmatmul.mubr.bf16.vlgmr.msra.gmra.mxu1 %v1480_v30 }
 0x90b   : > { %v1585_v32 = vpop.f32.mrf.mxu1 }
 0x90c   : > { %v1586_v33 = vadd.f32 %v1710_v31, %v1585_v32 }
 0x90d   : > { %v1901_v34 = vpop.f32.mrf.mxu1 }
 0x90e   : > { %v1591_v35 = vadd.f32 %v1586_v33, %v2364_v55 }
 0x90f   : > { %v1588_v36 = vpop.f32.mrf.mxu1 }
 0x910   : > { %1592 = vst.msk [vmem:[%s431_s24] sm:$0xff] %vm445_vm0, %v1591_v35 }
 0x911   : > { %v1902_v37 = vpop.f32.mrf.mxu1 }
 0x912   : > { %2001 = shalt.err (!%p1998_p3)
}
 0x913   : > { %s2002_s23 = scalar_lea.hbm %s2427_s1, 128  ;;  %s2006_s15 = scalar_lea.hbm %s2482_s13, 256 }
 0x914   : > { %p2003_p4 = scmp.ne.s32.totalorder %s2427_s1, %s2002_s23  ;;  %p2007_p9 = scmp.lt.s32.totalorder %s2427_s1, %s2482_s13 }
 0x915   : > { %p2008_p10 = scmp.lt.s32.totalorder %s2006_s15, %s2002_s23 }
 0x916   : > { %p2004_p7 = pnand %p2003_p4, %p2163_p5 }
 0x917   : > { %p2009_p11 = por %p2008_p10, %p2007_p9 }
 0x918   : > { %p2005_p8 = pneg %p2004_p7 }
 0x91a   : > { %p2010_p12 = pnand %p2009_p11, %p2005_p8 }
 0x91c   : > { %2013 = shalt.err (!%p2010_p12)
}
 0x91d   : > { %1903 = dma.vmem_to_hbm [thread:$0]  (%p2163_p5), %s2429_s30, 128, %s2427_s1, %s1594_s29  }
 0x91e PF: > { %p1909_p13 = scmp.ge.s32.totalorder %s2048_s28, 2  ;;  %s1619_s20 = sand.u32 1, %s2036_s25  }
 0x91f   : > { %s1620_s2 = scalar_lea.sflag [#allocation3], %s1619_s20 }
 0x920   : > { %p1906_p0 = pnand %p1909_p13, %p2167_p6 }
 0x922   : > { %p1907_p1 = pneg %p1906_p0 }
 0x924   : > { %2031 = dma.done.wait (%p1907_p1), %s1620_s2, 128  }
 0x925   : > { %2033 = vsyncadd (%p1907_p1), %s1620_s2, 4294967168  ;;  %p23_p2 = scmp.ge.s32.totalorder %s2150_s14, 4   ;;  %s2491_s25 = smov %s2040_s26 }
 0x926   : > { %s2492_s26 = smov %s2044_s27  ;;  %s2493_s27 = smov %s2161_s17 }
 0x927   : > { %s2494_s28 = smov %s2150_s14  ;;  %25 = sbr.rel (!%p23_p2) target bundleno = 7 (0x7), region = 107 }
 0x92c   :  { %1625 = vsyncpa [#allocation3], 1 }
 0x92d   :  { %1627 = vsyncpa [#allocation3 + $0x1], 1 }

</bundles_post_ra>
